<compile_context>
chip_gen: v7x
topology: tpu7x:2x2x1
jax: 0.10.0
libtpu: 0.0.40
codegen_flags: <defaults>
</compile_context>

<pallas_src>
import functools

import jax
import jax.numpy as jnp
from jax.experimental import pallas as pl
from jax.experimental.pallas import tpu as pltpu

HIDDEN = 128      # hidden width of l1/l2 (fixed by the module)
LANE = 128        # TPU lane width
SUBLANE = 8       # TPU sublane width
NEG_INF = -1e30   # padded-action bias value (exp underflows to exactly 0)


def _round_up(n: int, m: int) -> int:
    return ((n + m - 1) // m) * m


def _policy_kernel(s_pad, x_ref, w_ref, b_ref, o_ref):
    """One batch tile: (TB, S_pad) states -> (TB, 128) action probabilities."""
    w_dt = w_ref.dtype

    x = x_ref[...].astype(w_dt)                               # (TB, S_pad)

    # Packed, VMEM-resident weights: [w1_pad ; w2 ; w3_pad] along rows.
    w1 = w_ref[pl.ds(0, s_pad), :]                            # (S_pad, 128)
    w2 = w_ref[pl.ds(s_pad, HIDDEN), :]                       # (128, 128)
    w3 = w_ref[pl.ds(s_pad + HIDDEN, HIDDEN), :]              # (128, 128), A padded

    b = b_ref[...]                                            # (3, 128) f32
    b1 = b[0:1, :]
    b2 = b[1:2, :]
    b3 = b[2:3, :]                                            # padded lanes = -1e30

    # Layer 1 + ReLU (accumulate f32 on the MXU, elementwise in f32).
    h1 = jnp.dot(x, w1, preferred_element_type=jnp.float32) + b1
    h1 = jnp.maximum(h1, 0.0)

    # Layer 2 + ReLU.
    h2 = jnp.dot(h1.astype(w_dt), w2, preferred_element_type=jnp.float32) + b2
    h2 = jnp.maximum(h2, 0.0)

    # Layer 3 logits; padded action lanes get -1e30 from the bias packing.
    logits = jnp.dot(h2.astype(w_dt), w3, preferred_element_type=jnp.float32) + b3

    # Row-wise (per-state) softmax over the action lanes.
    m = jnp.max(logits, axis=-1, keepdims=True)
    e = jnp.exp(logits - m)
    denom = jnp.sum(e, axis=-1, keepdims=True)
    o_ref[...] = e * pl.reciprocal(denom, approx=False)


def init_policy_params(key, state_size: int, action_size: int):
    """Deterministic init mimicking nn.Linear default (U[-1/sqrt(fan_in), +])."""
    ks = jax.random.split(key, 6)

    def linear(kw, kb, fan_in, fan_out):
        bound = 1.0 / jnp.sqrt(jnp.float32(fan_in))
        w = jax.random.uniform(kw, (fan_in, fan_out), jnp.float32, -bound, bound)
        b = jax.random.uniform(kb, (fan_out,), jnp.float32, -bound, bound)
        return w, b

    w1, b1 = linear(ks[0], ks[1], state_size, HIDDEN)
    w2, b2 = linear(ks[2], ks[3], HIDDEN, HIDDEN)
    w3, b3 = linear(ks[4], ks[5], HIDDEN, action_size)
    return dict(w1=w1, b1=b1, w2=w2, b2=b2, w3=w3, b3=b3)


def policy_net_forward(x, params, *, batch_tile: int = 128):
    """x: (S,) or (B, S) float32 -> (A,) or (B, A) action probabilities.

    For a 1-D state this matches torch's softmax(dim=0) (softmax over actions);
    for a batch it applies the module independently per row.
    """
    w1, b1 = params["w1"], params["b1"]
    w2, b2 = params["w2"], params["b2"]
    w3, b3 = params["w3"], params["b3"]

    S = w1.shape[0]
    A = w3.shape[1]
    assert w1.shape[1] == HIDDEN and w2.shape == (HIDDEN, HIDDEN)
    assert w3.shape[0] == HIDDEN
    # TODO(synk): action_size > 128 would need a lane-tiled layer 3 / softmax.
    assert A <= LANE, "packed layout assumes action_size <= 128"

    x = jnp.asarray(x, jnp.float32)
    squeeze = x.ndim == 1
    if squeeze:
        x = x[None, :]
    B = x.shape[0]
    assert x.shape[1] == S

    # Padded / tiled geometry.
    S_pad = _round_up(S, LANE)
    A_pad = LANE
    B8 = _round_up(B, SUBLANE)
    TB = min(_round_up(batch_tile, SUBLANE), B8)   # batch tile (multiple of 8)
    B_pad = _round_up(B8, TB)
    n_tiles = B_pad // TB

    param_dtype = w1.dtype  # f32, or bf16 on v6e/v7x for half the weight DMA

    # ---- Pack 7 operands into 3 arrays (fewer HBM->VMEM DMAs) ----
    x_p = jnp.zeros((B_pad, S_pad), jnp.float32).at[:B, :S].set(x)

    w1_p = jnp.zeros((S_pad, HIDDEN), param_dtype).at[:S, :].set(w1.astype(param_dtype))
    w3_p = jnp.zeros((HIDDEN, A_pad), param_dtype).at[:, :A].set(w3.astype(param_dtype))
    w_all = jnp.concatenate([w1_p, w2.astype(param_dtype), w3_p], axis=0)

    b3_p = jnp.full((A_pad,), NEG_INF, jnp.float32).at[:A].set(b3.astype(jnp.float32))
    b_all = jnp.stack(
        [b1.astype(jnp.float32), b2.astype(jnp.float32), b3_p], axis=0
    )  # (3, 128)

    out = pl.pallas_call(
        functools.partial(_policy_kernel, S_pad),
        out_shape=jax.ShapeDtypeStruct((B_pad, A_pad), jnp.float32),
        grid=(n_tiles,),
        in_specs=[
            pl.BlockSpec((TB, S_pad), lambda i: (i, 0)),                   # batch tile
            pl.BlockSpec((S_pad + 2 * HIDDEN, HIDDEN), lambda i: (0, 0)),  # weights resident
            pl.BlockSpec((3, HIDDEN), lambda i: (0, 0)),                   # biases resident
        ],
        out_specs=pl.BlockSpec((TB, A_pad), lambda i: (i, 0)),
        compiler_params=pltpu.CompilerParams(
            dimension_semantics=("parallel",),  # v7x: shard batch across the 2 TCs
        ),
    )(x_p, w_all, b_all)

    probs = out[:B, :A]
    return probs[0] if squeeze else probs


def _reference_forward(x, params):
    x = jnp.asarray(x, jnp.float32)
    h1 = jnp.maximum(x @ params["w1"] + params["b1"], 0.0)
    h2 = jnp.maximum(h1 @ params["w2"] + params["b2"], 0.0)
    logits = h2 @ params["w3"] + params["b3"]
    # For a 1-D input, axis=-1 is the same axis as torch's softmax(dim=0).
    return jax.nn.softmax(logits, axis=-1)


if __name__ == "__main__":
    state_size, action_size = 32, 8
    key = jax.random.PRNGKey(0)
    k_params, k_x1, k_xb = jax.random.split(key, 3)

    params = init_policy_params(k_params, state_size, action_size)

    # 1) Single-state path (exact semantics of the PyTorch module).
    x1 = jax.random.normal(k_x1, (state_size,), dtype=jnp.float32)
    p1 = jax.block_until_ready(policy_net_forward(x1, params))
    r1 = _reference_forward(x1, params)
    assert p1.shape == (action_size,)
    assert jnp.allclose(p1, r1, atol=1e-5, rtol=1e-5), (p1, r1)
    assert jnp.isclose(jnp.sum(p1), 1.0, atol=1e-5)

    # 2) Batched rollout path (weights resident in VMEM, batch tiled on grid).
    xb = jax.random.normal(k_xb, (5, state_size), dtype=jnp.float32)
    pb = jax.block_until_ready(policy_net_forward(xb, params))
    rb = _reference_forward(xb, params)
    assert pb.shape == (5, action_size)
    assert jnp.allclose(pb, rb, atol=1e-5, rtol=1e-5), (pb, rb)
    assert jnp.allclose(jnp.sum(pb, axis=-1), 1.0, atol=1e-5)

    # 3) bf16 weights (recommended on v6e/v7x): same kernel, half the weight DMA,
    #    single-pass MXU; bias/relu/softmax stay f32 (v5e-safe).
    params_bf16 = {
        k: (v.astype(jnp.bfloat16) if k.startswith("w") else v)
        for k, v in params.items()
    }
    pb16 = jax.block_until_ready(policy_net_forward(xb, params_bf16))
    assert pb16.shape == (5, action_size)
    assert jnp.allclose(jnp.sum(pb16, axis=-1), 1.0, atol=1e-3)
    assert jnp.allclose(pb16, rb, atol=3e-2)

    print("KERNEL_OK")
</pallas_src>

<mosaic_0001>
module attributes {stable_mosaic.version = 11 : i64} {
  func.func @_policy_kernel(%arg0: i32, %arg1: memref<8x128xf32, #tpu.memory_space<vmem>>, %arg2: memref<384x128xf32, #tpu.memory_space<vmem>>, %arg3: memref<3x128xf32, #tpu.memory_space<vmem>>, %arg4: memref<8x128xf32, #tpu.memory_space<vmem>>) attributes {dimension_semantics = [#tpu.dimension_semantics<parallel>], iteration_bounds = array<i64: 1>, scalar_prefetch = 0 : i64, scratch_operands = 0 : i64, tpu.core_type = #tpu.core_type<tc>, window_params = [{transform_indices = @transform_0, window_bounds = array<i64: 8, 128>}, {pipeline_mode = #tpu.pipeline_mode<synchronous>, transform_indices = @transform_1, window_bounds = array<i64: 384, 128>}, {pipeline_mode = #tpu.pipeline_mode<synchronous>, transform_indices = @transform_2, window_bounds = array<i64: 3, 128>}, {transform_indices = @transform_3, window_bounds = array<i64: 8, 128>}]} {
    %c0 = arith.constant 0 : index
    %c0_0 = arith.constant 0 : index
    %0 = vector.load %arg1[%c0, %c0_0] : memref<8x128xf32, #tpu.memory_space<vmem>>, vector<8x128xf32>
    %c0_1 = arith.constant 0 : index
    %c0_2 = arith.constant 0 : index
    %1 = vector.load %arg2[%c0_1, %c0_2] : memref<384x128xf32, #tpu.memory_space<vmem>>, vector<128x128xf32>
    %c128 = arith.constant 128 : index
    %c0_3 = arith.constant 0 : index
    %2 = vector.load %arg2[%c128, %c0_3] : memref<384x128xf32, #tpu.memory_space<vmem>>, vector<128x128xf32>
    %c256 = arith.constant 256 : index
    %c0_4 = arith.constant 0 : index
    %3 = vector.load %arg2[%c256, %c0_4] : memref<384x128xf32, #tpu.memory_space<vmem>>, vector<128x128xf32>
    %c0_5 = arith.constant 0 : index
    %c0_6 = arith.constant 0 : index
    %4 = vector.load %arg3[%c0_5, %c0_6] : memref<3x128xf32, #tpu.memory_space<vmem>>, vector<3x128xf32>
    %5 = vector.extract_strided_slice %4 {offsets = [0, 0], sizes = [1, 128], strides = [1, 1]} : vector<3x128xf32> to vector<1x128xf32>
    %6 = vector.extract_strided_slice %4 {offsets = [1, 0], sizes = [1, 128], strides = [1, 1]} : vector<3x128xf32> to vector<1x128xf32>
    %7 = vector.extract_strided_slice %4 {offsets = [2, 0], sizes = [1, 128], strides = [1, 1]} : vector<3x128xf32> to vector<1x128xf32>
    %cst = arith.constant dense<0.000000e+00> : vector<8x128xf32>
    %8 = tpu.matmul %0, %1, %cst {dimension_numbers = #tpu.dot_dimension_numbers<[1], [0], [0], [1], [0, 0, 1, 1], [], []>} : vector<8x128xf32>, vector<128x128xf32>, vector<8x128xf32> -> vector<8x128xf32>
    %9 = vector.broadcast %5 : vector<1x128xf32> to vector<8x128xf32>
    %10 = arith.addf %8, %9 : vector<8x128xf32>
    %cst_7 = arith.constant 0.000000e+00 : f32
    %11 = vector.broadcast %cst_7 : f32 to vector<8x128xf32>
    %12 = arith.maximumf %10, %11 : vector<8x128xf32>
    %cst_8 = arith.constant dense<0.000000e+00> : vector<8x128xf32>
    %13 = tpu.matmul %12, %2, %cst_8 {dimension_numbers = #tpu.dot_dimension_numbers<[1], [0], [0], [1], [0, 0, 1, 1], [], []>} : vector<8x128xf32>, vector<128x128xf32>, vector<8x128xf32> -> vector<8x128xf32>
    %14 = vector.broadcast %6 : vector<1x128xf32> to vector<8x128xf32>
    %15 = arith.addf %13, %14 : vector<8x128xf32>
    %cst_9 = arith.constant 0.000000e+00 : f32
    %16 = vector.broadcast %cst_9 : f32 to vector<8x128xf32>
    %17 = arith.maximumf %15, %16 : vector<8x128xf32>
    %cst_10 = arith.constant dense<0.000000e+00> : vector<8x128xf32>
    %18 = tpu.matmul %17, %3, %cst_10 {dimension_numbers = #tpu.dot_dimension_numbers<[1], [0], [0], [1], [0, 0, 1, 1], [], []>} : vector<8x128xf32>, vector<128x128xf32>, vector<8x128xf32> -> vector<8x128xf32>
    %19 = vector.broadcast %7 : vector<1x128xf32> to vector<8x128xf32>
    %20 = arith.addf %18, %19 : vector<8x128xf32>
    %cst_11 = arith.constant dense<0xFF800000> : vector<8xf32>
    %21 = vector.multi_reduction <maximumf>, %20, %cst_11 [1] : vector<8x128xf32> to vector<8xf32>
    %22 = vector.shape_cast %21 : vector<8xf32> to vector<8x1xf32>
    %23 = vector.broadcast %22 : vector<8x1xf32> to vector<8x128xf32>
    %24 = arith.subf %20, %23 : vector<8x128xf32>
    %25 = math.exp %24 : vector<8x128xf32>
    %cst_12 = arith.constant dense<0.000000e+00> : vector<8xf32>
    %26 = vector.multi_reduction <add>, %25, %cst_12 [1] : vector<8x128xf32> to vector<8xf32>
    %27 = vector.shape_cast %26 : vector<8xf32> to vector<8x1xf32>
    %28 = tpu.reciprocal %27 : vector<8x1xf32> -> vector<8x1xf32>
    %29 = vector.broadcast %28 : vector<8x1xf32> to vector<8x128xf32>
    %30 = arith.mulf %25, %29 : vector<8x128xf32>
    %c0_13 = arith.constant 0 : index
    %c0_14 = arith.constant 0 : index
    %31 = vector.load %arg4[%c0_13, %c0_14] : memref<8x128xf32, #tpu.memory_space<vmem>>, vector<8x128xf32>
    tpu.vector_store %arg4[%c0_13, %c0_14], %30 {strides = array<i32>} : memref<8x128xf32, #tpu.memory_space<vmem>>, vector<8x128xf32>,
    return
  }
  func.func @transform_0(%arg0: i32) -> (i32, i32) {
    %c0_i32 = arith.constant 0 : i32
    %c0_i32_0 = arith.constant 0 : i32
    return %arg0, %c0_i32 : i32, i32
  }
  func.func @transform_1(%arg0: i32) -> (i32, i32) {
    %c0_i32 = arith.constant 0 : i32
    %c0_i32_0 = arith.constant 0 : i32
    %c0_i32_1 = arith.constant 0 : i32
    return %c0_i32, %c0_i32_0 : i32, i32
  }
  func.func @transform_2(%arg0: i32) -> (i32, i32) {
    %c0_i32 = arith.constant 0 : i32
    %c0_i32_0 = arith.constant 0 : i32
    %c0_i32_1 = arith.constant 0 : i32
    return %c0_i32, %c0_i32_0 : i32, i32
  }
  func.func @transform_3(%arg0: i32) -> (i32, i32) {
    %c0_i32 = arith.constant 0 : i32
    %c0_i32_0 = arith.constant 0 : i32
    return %arg0, %c0_i32 : i32, i32
  }
}

</mosaic_0001>

<bundles_post_ra>
// kernel: tpu_custom_call.1
= control target key start
LH: loop header
LB: loop body
LE: loop exit
PB: predicated region body
PF: predicated region fallthrough
CT: control target
= control target key end

     0   :  { %8 = vsyncpa [#allocation3], 0  ;;  %s757_s0 = inlined_call_operand.hbm [shape: f32[8,128], index: 0, kind: input, shape index: {}]   ;;  %s758_s1 = inlined_call_operand.hbm [shape: f32[384,128], index: 1, kind: input, shape index: {}]   ;;  %s759_s2 = inlined_call_operand.vmem [shape: f32[3,128], index: 2, kind: input, shape index: {}]   ;;  %s760_s3 = inlined_call_operand.hbm [shape: f32[8,128], index: 3, kind: output, shape index: {}]  }
   0x1   :  { %9 = vsyncpa [#allocation6], 0 }
   0x2   :  { %10 = vsyncpa [#allocation4], 0  ;;  %s653_s12 = smov [#allocation2]   ;;  %s654_s14 = smov [#allocation5]  }
   0x3   :  { %s17_s13 = sshll.u32 %s653_s12, 4  ;;  %s26_s15 = sshll.u32 %s654_s14, 4  ;;  %s18_s13 = int_to_ptr.vmem [resolvable:$true] %s17_s13  ;;  %s681_s15 = int_to_ptr.vmem [resolvable:$true] %s26_s15 }
   0x4   :  { %s581_s18 = scalar_lea.hbm %s757_s0, 128 }
   0x5   :  { %p582_p0 = scmp.ne.s32.totalorder %s757_s0, %s581_s18  ;;  %p585_p1 = scmp.lt.u32.totalorder %s581_s18, %s757_s0 }
   0x7   :  { %p587_p2 = pnand %p585_p1, %p582_p0 }
   0x9   :  { %590 = shalt.err (!%p587_p2)
}
   0xa   :  { %s591_s23 = scalar_lea.vmem %s18_s13, 128  ;;  %p596_p4 = scmp.lt.s32.totalorder %s18_s13, %s18_s13 }
   0xb   :  { %p592_p3 = scmp.ne.s32.totalorder %s18_s13, %s591_s23  ;;  %p597_p5 = scmp.lt.s32.totalorder %s591_s23, %s591_s23 }
   0xd   :  { %p598_p6 = por %p597_p5, %p596_p4 }
   0xf   :  { %p599_p7 = pnand %p598_p6, %p592_p3 }
  0x11   :  { %602 = shalt.err (!%p599_p7)
}
  0x12   :  { %20 = dma.hbm_to_vmem [thread:$0]  %s757_s0, 128, %s18_s13, [#allocation3]  }
  0x13   :  { %s603_s28 = scalar_lea.hbm %s758_s1, 6144 }
  0x14   :  { %p604_p8 = scmp.ne.s32.totalorder %s758_s1, %s603_s28  ;;  %p607_p9 = scmp.lt.u32.totalorder %s603_s28, %s758_s1 }
  0x16   :  { %p609_p10 = pnand %p607_p9, %p604_p8 }
  0x18   :  { %612 = shalt.err (!%p609_p10)
}
  0x19   :  { %s613_s6 = scalar_lea.vmem %s681_s15, 6144  ;;  %p618_p12 = scmp.lt.s32.totalorder %s681_s15, %s681_s15 }
  0x1a   :  { %p614_p11 = scmp.ne.s32.totalorder %s681_s15, %s613_s6  ;;  %p619_p13 = scmp.lt.s32.totalorder %s613_s6, %s613_s6 }
  0x1c   :  { %p620_p0 = por %p619_p13, %p618_p12 }
  0x1e   :  { %p621_p1 = pnand %p620_p0, %p614_p11 }
  0x20   :  { %624 = shalt.err (!%p621_p1)
}
  0x21   :  { %s655_s0 = smov 128   ;;  %s656_s7 = smov 8  }
  0x22   :  { %32 = dma.hbm_to_vmem [thread:$0]  %s758_s1, 6144, %s681_s15, [#allocation6], %s655_s0, %s655_s0, %s656_s7  }
  0x23   :  { %647 = dma.done.wait [#allocation3], 128  }
  0x24   :  { %648 = vsyncadd [#allocation3], 4294967168 }
  0x25   :  { %649 = dma.done.wait [#allocation6], 6144  }
  0x26   :  { %650 = vsyncadd [#allocation6], 4294961152  ;;  %v657_v0 = vmov 0.0|0.0   ;;  %vm658_vm0 = vmmov 0   ;;  %v659_v1 = vmov 0.0   ;;  %v42_v2 = vld [vmem:[#allocation5] sm:$0xff] }
  0x27   :  { %497 = vmatprep.subr.bf16.mxu0 %v657_v0  ;;  %424 = vmatprep.mubr.msk.f32.mxu0 %vm658_vm0, %v659_v1  ;;  %v43_v3 = vld [vmem:[#allocation5 + $0x8] sm:$0xff]  ;;  %v44_v4 = vld [vmem:[#allocation5 + $0x10] sm:$0xff]  ;;  %v45_v6 = vld [vmem:[#allocation5 + $0x18] sm:$0xff] }
  0x28   :  { %521 = vmatprep.subr.bf16.mxu1 %v657_v0  ;;  %459 = vmatprep.mubr.msk.f32.mxu1 %vm658_vm0, %v659_v1  ;;  %v498_v5 = vpack.c.bf16 %v43_v3, %v42_v2  ;;  %v501_v7 = vpack.c.bf16 %v45_v6, %v44_v4  ;;  %v46_v8 = vld [vmem:[#allocation5 + $0x20] sm:$0xff]  ;;  %v47_v9 = vld [vmem:[#allocation5 + $0x28] sm:$0xff]  ;;  %v60_v12 = vld [vmem:[#allocation5 + $0x90] sm:$0xff] }
  0x29   :  { %v58_v10 = vld [vmem:[#allocation5 + $0x80] sm:$0xff]  ;;  %v59_v11 = vld [vmem:[#allocation5 + $0x88] sm:$0xff]  ;;  %v61_v13 = vld [vmem:[#allocation5 + $0x98] sm:$0xff]  ;;  %v504_v14 = vpack.c.bf16 %v47_v9, %v46_v8  ;;  %v91_v9 = vlaneseq }
  0x2a   :  { %499 = vmatpush3.bf16.msra.mxu0 %v498_v5  ;;  %v522_v15 = vpack.c.bf16 %v59_v11, %v58_v10  ;;  %v48_v16 = vld [vmem:[#allocation5 + $0x30] sm:$0xff]  ;;  %v49_v17 = vld [vmem:[#allocation5 + $0x38] sm:$0xff]  ;;  %v525_v18 = vpack.c.bf16 %v61_v13, %v60_v12  ;;  %v62_v19 = vld [vmem:[#allocation5 + $0xa0] sm:$0xff] }
  0x2b   :  { %500 = vmatprep.subr.bf16.mxu0 %v657_v0  ;;  %v63_v20 = vld [vmem:[#allocation5 + $0xa8] sm:$0xff]  ;;  %v507_v21 = vpack.c.bf16 %v49_v17, %v48_v16  ;;  %v50_v22 = vld [vmem:[#allocation5 + $0x40] sm:$0xff]  ;;  %v64_v25 = vld [vmem:[#allocation5 + $0xb0] sm:$0xff]  ;;  %v92_v10 = vshrl.u32 %v91_v9, 7 }
  0x2c   :  { %523 = vmatpush3.bf16.msra.mxu1 %v522_v15  ;;  %v51_v23 = vld [vmem:[#allocation5 + $0x48] sm:$0xff]  ;;  %v528_v24 = vpack.c.bf16 %v63_v20, %v62_v19  ;;  %v65_v26 = vld [vmem:[#allocation5 + $0xb8] sm:$0xff]  ;;  %v52_v28 = vld [vmem:[#allocation5 + $0x50] sm:$0xff] }
  0x2d   :  { %524 = vmatprep.subr.bf16.mxu1 %v657_v0  ;;  %v510_v27 = vpack.c.bf16 %v51_v23, %v50_v22  ;;  %v53_v29 = vld [vmem:[#allocation5 + $0x58] sm:$0xff]  ;;  %v531_v30 = vpack.c.bf16 %v65_v26, %v64_v25  ;;  %v66_v31 = vld [vmem:[#allocation5 + $0xc0] sm:$0xff]  ;;  %v67_v32 = vld [vmem:[#allocation5 + $0xc8] sm:$0xff]  ;;  %v93_v11 = vsub.s32 0, %v92_v10  ;;  %v243_v26 = vsub.s32 2, %v92_v10 }
  0x2e   :  { %502 = vmatpush3.bf16.msra.mxu0 %v501_v7  ;;  %v513_v33 = vpack.c.bf16 %v53_v29, %v52_v28  ;;  %v54_v34 = vld [vmem:[#allocation5 + $0x60] sm:$0xff]  ;;  %v55_v35 = vld [vmem:[#allocation5 + $0x68] sm:$0xff]  ;;  %v534_v36 = vpack.c.bf16 %v67_v32, %v66_v31  ;;  %v68_v37 = vld [vmem:[#allocation5 + $0xd0] sm:$0xff] }
  0x2f   :  { %503 = vmatprep.subr.bf16.mxu0 %v657_v0  ;;  %v69_v38 = vld [vmem:[#allocation5 + $0xd8] sm:$0xff]  ;;  %v516_v39 = vpack.c.bf16 %v55_v35, %v54_v34  ;;  %v56_v40 = vld [vmem:[#allocation5 + $0x70] sm:$0xff]  ;;  %v70_v43 = vld [vmem:[#allocation5 + $0xe0] sm:$0xff] }
  0x30   :  { %526 = vmatpush3.bf16.msra.mxu1 %v525_v18  ;;  %v57_v41 = vld [vmem:[#allocation5 + $0x78] sm:$0xff]  ;;  %v537_v42 = vpack.c.bf16 %v69_v38, %v68_v37  ;;  %v71_v44 = vld [vmem:[#allocation5 + $0xe8] sm:$0xff]  ;;  %v72_v48 = vld [vmem:[#allocation5 + $0xf0] sm:$0xff] }
  0x31   :  { %527 = vmatprep.subr.bf16.mxu1 %v657_v0  ;;  %v519_v45 = vpack.c.bf16 %v57_v41, %v56_v40  ;;  %v540_v46 = vpack.c.bf16 %v71_v44, %v70_v43  ;;  %v41_v47 = vld [vmem:[#allocation2] sm:$0xff]  ;;  %v74_v51 = vld [vmem:[#allocation5 + $0x100] sm:$0xff]  ;;  %v75_v52 = vld [vmem:[#allocation5 + $0x108] sm:$0xff] }
  0x32   :  { %505 = vmatpush3.bf16.msra.mxu0 %v504_v14  ;;  %v73_v49 = vld [vmem:[#allocation5 + $0xf8] sm:$0xff]  ;;  %v76_v53 = vld [vmem:[#allocation5 + $0x110] sm:$0xff]  ;;  %v546_v54 = vpack.c.bf16 %v75_v52, %v74_v51  ;;  %v78_v57 = vld [vmem:[#allocation5 + $0x120] sm:$0xff] }
  0x33   :  { %506 = vmatprep.subr.bf16.mxu0 %v657_v0  ;;  %v543_v50 = vpack.c.bf16 %v73_v49, %v72_v48  ;;  %v77_v55 = vld [vmem:[#allocation5 + $0x118] sm:$0xff]  ;;  %v79_v58 = vld [vmem:[#allocation5 + $0x128] sm:$0xff]  ;;  %v80_v60 = vld [vmem:[#allocation5 + $0x130] sm:$0xff] }
  0x34   :  { %529 = vmatpush3.bf16.msra.mxu1 %v528_v24  ;;  %v549_v56 = vpack.c.bf16 %v77_v55, %v76_v53  ;;  %v552_v59 = vpack.c.bf16 %v79_v58, %v78_v57  ;;  %v81_v61 = vld [vmem:[#allocation5 + $0x138] sm:$0xff]  ;;  %v82_v63 = vld [vmem:[#allocation5 + $0x140] sm:$0xff]  ;;  %v84_v3 = vld [vmem:[#allocation5 + $0x150] sm:$0xff] }
  0x35   :  { %530 = vmatprep.subr.bf16.mxu1 %v657_v0  ;;  %v555_v62 = vpack.c.bf16 %v81_v61, %v80_v60  ;;  %v85_v4 = vld [vmem:[#allocation5 + $0x158] sm:$0xff]  ;;  %v86_v6 = vld [vmem:[#allocation5 + $0x160] sm:$0xff]  ;;  %v87_v7 = vld [vmem:[#allocation5 + $0x168] sm:$0xff] }
  0x36   :  { %508 = vmatpush3.bf16.msra.mxu0 %v507_v21  ;;  %v561_v5 = vpack.c.bf16 %v85_v4, %v84_v3  ;;  %v564_v8 = vpack.c.bf16 %v87_v7, %v86_v6  ;;  %v90_v12 = vld [vmem:[%s759_s2] sm:$0x7]  ;;  %v88_v18 = vld [vmem:[#allocation5 + $0x170] sm:$0xff]  ;;  %v168_v21 = vsub.s32 1, %v92_v10  ;;  %s660_s2 = smov [#allocation7]  }
  0x37   :  { %509 = vmatprep.subr.bf16.mxu0 %v657_v0  ;;  %v94_v13 = vrot.slane %v90_v12, %v93_v11  ;;  %v89_v19 = vld [vmem:[#allocation5 + $0x178] sm:$0xff]  ;;  %s331_s11 = sshll.u32 %s660_s2, 4  ;;  %s332_s11 = int_to_ptr.vmem [resolvable:$true] %s331_s11 }
  0x38   :  { %532 = vmatpush3.bf16.msra.mxu1 %v531_v30  ;;  %v567_v20 = vpack.c.bf16 %v89_v19, %v88_v18  ;;  %v169_v22 = vrot.slane %v90_v12, %v168_v21  ;;  %s625_s12 = scalar_lea.vmem %s332_s11, 128  ;;  %p630_p3 = scmp.lt.s32.totalorder %s332_s11, %s332_s11 }
  0x39   :  { %533 = vmatprep.subr.bf16.mxu1 %v657_v0  ;;  %p626_p2 = scmp.ne.s32.totalorder %s332_s11, %s625_s12  ;;  %p631_p4 = scmp.lt.s32.totalorder %s625_s12, %s625_s12 }
  0x3a   :  { %511 = vmatpush3.bf16.msra.mxu0 %v510_v27  ;;  %v244_v27 = vrot.slane %v90_v12, %v243_v26 }
  0x3b   :  { %512 = vmatprep.subr.bf16.mxu0 %v657_v0  ;;  %p632_p5 = por %p631_p4, %p630_p3 }
  0x3c   :  { %535 = vmatpush3.bf16.msra.mxu1 %v534_v36 }
  0x3d   :  { %536 = vmatprep.subr.bf16.mxu1 %v657_v0  ;;  %p633_p6 = pnand %p632_p5, %p626_p2 }
  0x3e   :  { %514 = vmatpush3.bf16.msra.mxu0 %v513_v33 }
  0x3f   :  { %515 = vmatprep.subr.bf16.mxu0 %v657_v0 }
  0x40   :  { %538 = vmatpush3.bf16.msra.mxu1 %v537_v42 }
  0x41   :  { %539 = vmatprep.subr.bf16.mxu1 %v657_v0 }
  0x42   :  { %517 = vmatpush3.bf16.msra.mxu0 %v516_v39 }
  0x43   :  { %518 = vmatprep.subr.bf16.mxu0 %v657_v0 }
  0x44   :  { %541 = vmatpush3.bf16.msra.mxu1 %v540_v46 }
  0x45   :  { %542 = vmatprep.subr.bf16.mxu1 %v657_v0 }
  0x46   :  { %520 = vmatpush3.bf16.msra.mxu0 %v519_v45 }
  0x47   :  { %545 = vmatprep.subr.bf16.mxu0 %v657_v0 }
  0x48   :  { %544 = vmatpush3.bf16.msra.mxu1 %v543_v50 }
  0x49   :  { %425 = vmatmul.mubr.f32.vlgmr.msra.gmra.mrb[0].mxu0 %v41_v47 }
  0x4a   :  { %494 = vmatprep.mubr.msk.f32.mxu0 %vm658_vm0, %v659_v1  ;;  %547 = vmatpush3.bf16.msra.mxu0 %v546_v54  ;;  %v83_v1 = vld [vmem:[#allocation5 + $0x148] sm:$0xff] }
  0x4b   :  { %548 = vmatprep.subr.bf16.mxu0 %v657_v0  ;;  %v558_v2 = vpack.c.bf16 %v83_v1, %v82_v63 }
  0x4e   :  { %550 = vmatpush3.bf16.msra.mxu0 %v549_v56 }
  0x4f   :  { %551 = vmatprep.subr.bf16.mxu0 %v657_v0 }
  0x52   :  { %553 = vmatpush3.bf16.msra.mxu0 %v552_v59 }
  0x53   :  { %554 = vmatprep.subr.bf16.mxu0 %v657_v0 }
  0x56   :  { %556 = vmatpush3.bf16.msra.mxu0 %v555_v62 }
  0x57   :  { %557 = vmatprep.subr.bf16.mxu0 %v657_v0 }
  0x5a   :  { %559 = vmatpush3.bf16.msra.mxu0 %v558_v2 }
  0x5b   :  { %560 = vmatprep.subr.bf16.mxu0 %v657_v0 }
  0x5e   :  { %562 = vmatpush3.bf16.msra.mxu0 %v561_v5 }
  0x5f   :  { %563 = vmatprep.subr.bf16.mxu0 %v657_v0 }
  0x62   :  { %565 = vmatpush3.bf16.msra.mxu0 %v564_v8 }
  0x63   :  { %566 = vmatprep.subr.bf16.mxu0 %v657_v0 }
  0x66   :  { %568 = vmatpush3.bf16.msra.mxu0 %v567_v20 }
 0x11c   :  { %v161_v14 = vpop.f32.mrb[0].mxu0 }
 0x11d   :  { %v162_v15 = vadd.f32 %v161_v14, %v94_v13  ;;  %v426_v16 = vpop.f32.mrb[1].mxu0 }
 0x11f   :  { %v165_v17 = vmax.f32 %v162_v15, 0.0 }
 0x121   :  { %460 = vmatmul.mubr.f32.vlgmr.msra.gmra.mrb[0].mxu1 %v165_v17 }
 0x1f4   :  { %v236_v0 = vpop.f32.mrb[0].mxu1 }
 0x1f5   :  { %v237_v23 = vadd.f32 %v236_v0, %v169_v22  ;;  %v461_v24 = vpop.f32.mrb[1].mxu1 }
 0x1f7   :  { %v240_v25 = vmax.f32 %v237_v23, 0.0 }
 0x1f9   :  { %495 = vmatmul.mubr.f32.vlgmr.msra.gmra.mrb[2].mxu0 %v240_v25 }
 0x2cc   :  { %v311_v28 = vpop.f32.mrb[2].mxu0 }
 0x2cd   :  { %v312_v29 = vadd.f32 %v311_v28, %v244_v27  ;;  %v496_v30 = vpop.f32.mrb[3].mxu0 }
 0x2cf   :  { %315 = vmax.xlane.f32.xlu0 %v312_v29 }
 0x35c   :  { %v316_v31 = vpop.xlane.xlu0 %315 }
 0x35d   :  { %v317_v32 = vsub.f32 %v312_v29, %v316_v31 }
 0x35f   :  { %v318_v33 = vmul.f32 1.442695, %v317_v32 }
 0x361   :  { %577 = vpow2.f32 %v318_v33 }
 0x36b   :  { %v578_v34 = vpop.eup %577 }
 0x36c   :  { %320 = vadd.xlane.f32.xlu0 %v578_v34 }
 0x3f9   :  { %v321_v35 = vpop.xlane.xlu0 %320 }
 0x3fa   :  { %579 = vrcp.f32 %v321_v35 }
 0x404   :  { %v580_v36 = vpop.eup %579 }
 0x405   :  { %v323_v37 = vmul.f32 %v580_v36, %v578_v34 }
 0x407   :  { %324 = vst [vmem:[#allocation7] sm:$0xff] %v323_v37 }
 0x408   :  { %636 = shalt.err (!%p633_p6)
}
 0x409   :  { %s637_s15 = scalar_lea.hbm %s760_s3, 128 }
 0x40a   :  { %p638_p7 = scmp.ne.s32.totalorder %s760_s3, %s637_s15  ;;  %p641_p8 = scmp.lt.u32.totalorder %s637_s15, %s760_s3 }
 0x40c   :  { %p643_p9 = pnand %p641_p8, %p638_p7 }
 0x40e   :  { %646 = shalt.err (!%p643_p9)
}
 0x40f   :  { %334 = dma.vmem_to_hbm [thread:$0]  %s332_s11, 128, %s760_s3, [#allocation4]  }
 0x410   :  { %651 = dma.done.wait [#allocation4], 128  }
 0x411   :  { %652 = vsyncadd [#allocation4], 4294967168 }
 0x412   :  { %338 = vsyncpa [#allocation3], 1 }
 0x413   :  { %339 = vsyncpa [#allocation6], 1 }
 0x414   :  { %340 = vsyncpa [#allocation4], 1 }

</bundles_post_ra>
